<compile_context>
chip_gen: v7x
topology: tpu7x:2x2x1
jax: 0.10.0
libtpu: 0.0.40
codegen_flags: <defaults>
</compile_context>

<pallas_src>
from functools import partial

import jax
import jax.numpy as jnp
from jax.experimental import pallas as pl
from jax.experimental.pallas import tpu as pltpu

CAT_FEATURES = ["Target", "Type", "Location"]
_HI = jax.lax.Precision.HIGHEST
IDX_BITS = 10  # bits per packed offset index (K_total must be <= 1024)


def _trans_embed_gather_kernel(idx_ref, hi_ref, lo_ref, o_ref, *,
                               fold, k_pad, num_feats, idx_bits):
    """One N-tile per grid step.

    idx_ref : (tile_rows, fold) int32 -- packed offset indices; bits
              [f*idx_bits, (f+1)*idx_bits) hold feature f's row in the
              concatenated fused table.
    hi/lo   : (fold*k_pad, fold*D) bf16 block-diagonal fused tables
              (hi + lo reconstructs the f32 fused table).
    o_ref   : (tile_rows, fold*D) f32; row g holds original rows
              g*fold .. g*fold + fold - 1 side by side (lane-dense store).
    """
    packed = idx_ref[...]                                  # (tile_rows, fold)
    tile_rows = packed.shape[0]
    mask = (1 << idx_bits) - 1
    k_ids = jax.lax.broadcasted_iota(jnp.int32, (tile_rows, k_pad), 1)

    # Summed one-hot selection matrix, built band-by-band. Feature bands in
    # the concatenated table are disjoint, so OR == sum and every entry is
    # exactly 0 or 1, which bf16 represents exactly.
    bands = []
    for j in range(fold):                                  # static unroll
        pj = packed[:, j:j + 1]                            # (tile_rows, 1)
        band = None
        for f in range(num_feats):                         # static unroll
            idx_f = (pj >> (idx_bits * f)) & mask
            hit = idx_f == k_ids                           # (tile_rows, k_pad) bool
            band = hit if band is None else (band | hit)
        bands.append(band.astype(jnp.bfloat16))
    sel = jnp.concatenate(bands, axis=1)                   # (tile_rows, fold*k_pad)

    # Two bf16 MXU passes (hi + lo residual), accumulated in f32: near-f32
    # accuracy at ~1/3 the vmatmul count of a HIGHEST f32 matmul.
    acc = jnp.dot(sel, hi_ref[...], preferred_element_type=jnp.float32)
    acc = acc + jnp.dot(sel, lo_ref[...], preferred_element_type=jnp.float32)
    o_ref[...] = acc


def pick_fold():
    """Rows folded per output row: 8 (256-wide) on v6e/v7x, else 4 (128-wide)."""
    try:
        kind = jax.devices()[0].device_kind.lower()
    except Exception:
        return 4
    if "v6" in kind or "v7" in kind:
        return 8
    return 4


def precompute_fused_tables(tables, weights_t, biases, fold):
    """Weight-load-time prep (NOT in the per-call path).

    Folds each Linear into its embedding table, concatenates the tables,
    block-diagonally replicates `fold` times along D, and splits into
    bf16 hi + bf16 lo residual.
    """
    cols = [c for c in CAT_FEATURES if c not in {"Labels", "Time"}]
    fused_rows, offsets, off = [], [], 0
    for i, c in enumerate(cols):
        fused_rows.append(
            jnp.dot(tables[c], weights_t[i], precision=_HI) + biases[i]
        )                                                   # (V_c, D)
        offsets.append(off)
        off += tables[c].shape[0]
    fused = jnp.concatenate(fused_rows, axis=0)             # (K, D) f32
    k_total, dim = fused.shape
    assert k_total <= (1 << IDX_BITS), (
        "vocab too large for packed-index one-hot gather; use direct gather")
    k_pad = max(128, ((k_total + 127) // 128) * 128)
    fused = jnp.pad(fused, ((0, k_pad - k_total), (0, 0)))

    # Block-diagonal replication: big[j*k_pad + k, j*D + d] = fused[k, d].
    big = jnp.kron(jnp.eye(fold, dtype=fused.dtype), fused)  # (fold*k_pad, fold*D)
    hi = big.astype(jnp.bfloat16)
    lo = (big - hi.astype(jnp.float32)).astype(jnp.bfloat16)

    return {
        "cols": cols,
        "offsets": offsets,
        "fold": fold,
        "k_pad": k_pad,
        "dim": dim,
        "hi": hi,
        "lo": lo,
    }


def trans_embedding_forward(indices, fused_state, tile_n_max=8192):
    """
    indices:     dict col -> (N,) int index vector (the `df[col]` columns)
    fused_state: output of precompute_fused_tables
    returns:     (N, D) float32
    """
    cols = fused_state["cols"]
    fold = fused_state["fold"]
    k_pad = fused_state["k_pad"]
    dim = fused_state["dim"]
    hi, lo = fused_state["hi"], fused_state["lo"]
    offsets = fused_state["offsets"]
    num_feats = len(cols)

    N = indices[cols[0]].shape[0]

    # Pack the per-feature table offsets into one int32 per row.
    packed = jnp.zeros((N,), jnp.int32)
    for f, c in enumerate(cols):
        packed = packed | (
            (indices[c].astype(jnp.int32) + offsets[f]) << (IDX_BITS * f)
        )

    # Tile selection: multiples of 8*fold rows, >=4 grid steps on large N
    # (megacore / dual-TC), capped at tile_n_max rows.
    gran = 8 * fold
    n_ceil = pl.cdiv(N, gran) * gran
    target = max(gran, pl.cdiv(pl.cdiv(N, 4), gran) * gran)
    tile_n = min(tile_n_max, target, n_ceil)
    n_pad = pl.cdiv(N, tile_n) * tile_n
    tile_rows = tile_n // fold

    # Padded rows carry index 0 (they gather real row 0 of feature band 0);
    # harmless because the wrapper slices out[:N] below.
    packed = jnp.pad(packed, (0, n_pad - N)).reshape(n_pad // fold, fold)

    flops = 4 * n_pad * k_pad * fold * dim                  # 2 bf16 passes
    bytes_accessed = (n_pad * 4                              # packed indices
                      + n_pad * dim * 4                      # f32 output
                      + 2 * (fold * k_pad) * (fold * dim) * 2)  # hi+lo tables

    out = pl.pallas_call(
        partial(_trans_embed_gather_kernel, fold=fold, k_pad=k_pad,
                num_feats=num_feats, idx_bits=IDX_BITS),
        out_shape=jax.ShapeDtypeStruct((n_pad // fold, fold * dim), jnp.float32),
        grid_spec=pltpu.PrefetchScalarGridSpec(
            num_scalar_prefetch=0,
            grid=(n_pad // tile_n,),
            in_specs=[
                # per-tile packed index block (last dim == full array dim)
                pl.BlockSpec((tile_rows, fold), lambda i: (i, 0)),
                # constant block-diagonal fused tables, resident in VMEM
                pl.BlockSpec((fold * k_pad, fold * dim), lambda i: (0, 0)),
                pl.BlockSpec((fold * k_pad, fold * dim), lambda i: (0, 0)),
            ],
            out_specs=pl.BlockSpec((tile_rows, fold * dim), lambda i: (i, 0)),
        ),
        compiler_params=pltpu.CompilerParams(
            dimension_semantics=("parallel",),
        ),
        cost_estimate=pl.CostEstimate(
            flops=flops, transcendentals=0, bytes_accessed=bytes_accessed),
    )(packed, hi, lo)

    # (n_pad//fold, fold*D) row-major is byte-identical to (n_pad, D): free.
    return out.reshape(n_pad, dim)[:N]


def reference_forward(indices, tables, weights_t, biases):
    cols = [c for c in CAT_FEATURES if c not in {"Labels", "Time"}]
    out = 0.0
    for i, c in enumerate(cols):
        e = jnp.take(tables[c], indices[c], axis=0)
        out = out + jnp.dot(e, weights_t[i], precision=_HI) + biases[i]
    return out


if __name__ == "__main__":
    # Small deterministic setup consistent with the module:
    #   in_feats D = 32, batch N = 8, vocab sizes per categorical column.
    D = 32
    N = 8
    vocab = {"Target": 10, "Type": 5, "Location": 7}

    key = jax.random.PRNGKey(0)
    k_idx, k_tab, k_w, k_b = jax.random.split(key, 4)

    # df[col]: integer index columns.
    idx_keys = jax.random.split(k_idx, len(CAT_FEATURES))
    indices = {
        c: jax.random.randint(idx_keys[i], (N,), 0, vocab[c], dtype=jnp.int32)
        for i, c in enumerate(CAT_FEATURES)
    }

    # nn.Embedding(vocab[c], D) tables.
    tab_keys = jax.random.split(k_tab, len(CAT_FEATURES))
    tables = {
        c: jax.random.normal(tab_keys[i], (vocab[c], D), dtype=jnp.float32)
        for i, c in enumerate(CAT_FEATURES)
    }

    # forward_mlp: one nn.Linear(D, D) per categorical feature.
    # PyTorch Linear weight is (out, in); we pre-transpose to (in, out).
    w_keys = jax.random.split(k_w, len(CAT_FEATURES))
    b_keys = jax.random.split(k_b, len(CAT_FEATURES))
    weights_t = jnp.stack(
        [jax.random.normal(w_keys[i], (D, D), dtype=jnp.float32).T * 0.1
         for i in range(len(CAT_FEATURES))], axis=0)          # (F, D, D)
    biases = jnp.stack(
        [jax.random.normal(b_keys[i], (1, D), dtype=jnp.float32) * 0.1
         for i in range(len(CAT_FEATURES))], axis=0)          # (F, 1, D)

    # NOTE: PosEncoding (time_pe) and label_table are constructed in __init__
    # but are not used in TransEmbedding.forward, so they are omitted here.

    # One-time (weight-load) prep, hoisted out of the per-call path.
    fused_state = precompute_fused_tables(tables, weights_t, biases,
                                          fold=pick_fold())
    fused_state = jax.tree_util.tree_map(
        lambda x: jax.block_until_ready(x) if isinstance(x, jax.Array) else x,
        fused_state)

    out = trans_embedding_forward(indices, fused_state)
    out = jax.block_until_ready(out)

    ref = reference_forward(indices, tables, weights_t, biases)
    assert out.shape == (N, D)
    assert jnp.allclose(out, ref, atol=1e-4, rtol=1e-4), "mismatch vs reference"

    print("KERNEL_OK")
</pallas_src>

<mosaic_0001>
module attributes {stable_mosaic.version = 11 : i64} {
  func.func @_trans_embed_gather_kernel(%arg0: i32, %arg1: memref<8x4xi32, #tpu.memory_space<vmem>>, %arg2: memref<512x128xbf16, #tpu.memory_space<vmem>>, %arg3: memref<512x128xbf16, #tpu.memory_space<vmem>>, %arg4: memref<8x128xf32, #tpu.memory_space<vmem>>) attributes {dimension_semantics = [#tpu.dimension_semantics<parallel>], iteration_bounds = array<i64: 1>, scalar_prefetch = 0 : i64, scratch_operands = 0 : i64, tpu.core_type = #tpu.core_type<tc>, window_params = [{transform_indices = @transform_0, window_bounds = array<i64: 8, 4>}, {pipeline_mode = #tpu.pipeline_mode<synchronous>, transform_indices = @transform_1, window_bounds = array<i64: 512, 128>}, {pipeline_mode = #tpu.pipeline_mode<synchronous>, transform_indices = @transform_2, window_bounds = array<i64: 512, 128>}, {transform_indices = @transform_3, window_bounds = array<i64: 8, 128>}]} {
    %c0 = arith.constant 0 : index
    %c0_0 = arith.constant 0 : index
    %0 = vector.load %arg1[%c0, %c0_0] : memref<8x4xi32, #tpu.memory_space<vmem>>, vector<8x4xi32>
    %1 = tpu.iota {dimensions = array<i32: 1>} : vector<8x128xi32>
    %2 = vector.extract_strided_slice %0 {offsets = [0, 0], sizes = [8, 1], strides = [1, 1]} : vector<8x4xi32> to vector<8x1xi32>
    %c0_i32 = arith.constant 0 : i32
    %3 = vector.broadcast %c0_i32 : i32 to vector<8x1xi32>
    %4 = arith.shrsi %2, %3 : vector<8x1xi32>
    %c1023_i32 = arith.constant 1023 : i32
    %5 = vector.broadcast %c1023_i32 : i32 to vector<8x1xi32>
    %6 = arith.andi %4, %5 : vector<8x1xi32>
    %7 = vector.broadcast %6 : vector<8x1xi32> to vector<8x128xi32>
    %8 = arith.cmpi eq, %7, %1 : vector<8x128xi32>
    %c10_i32 = arith.constant 10 : i32
    %9 = vector.broadcast %c10_i32 : i32 to vector<8x1xi32>
    %10 = arith.shrsi %2, %9 : vector<8x1xi32>
    %c1023_i32_1 = arith.constant 1023 : i32
    %11 = vector.broadcast %c1023_i32_1 : i32 to vector<8x1xi32>
    %12 = arith.andi %10, %11 : vector<8x1xi32>
    %13 = vector.broadcast %12 : vector<8x1xi32> to vector<8x128xi32>
    %14 = arith.cmpi eq, %13, %1 : vector<8x128xi32>
    %15 = arith.ori %8, %14 : vector<8x128xi1>
    %c20_i32 = arith.constant 20 : i32
    %16 = vector.broadcast %c20_i32 : i32 to vector<8x1xi32>
    %17 = arith.shrsi %2, %16 : vector<8x1xi32>
    %c1023_i32_2 = arith.constant 1023 : i32
    %18 = vector.broadcast %c1023_i32_2 : i32 to vector<8x1xi32>
    %19 = arith.andi %17, %18 : vector<8x1xi32>
    %20 = vector.broadcast %19 : vector<8x1xi32> to vector<8x128xi32>
    %21 = arith.cmpi eq, %20, %1 : vector<8x128xi32>
    %22 = arith.ori %15, %21 : vector<8x128xi1>
    %23 = arith.extui %22 : vector<8x128xi1> to vector<8x128xi32>
    %24 = arith.sitofp %23 : vector<8x128xi32> to vector<8x128xf32>
    %25 = arith.truncf %24 : vector<8x128xf32> to vector<8x128xbf16>
    %26 = vector.extract_strided_slice %0 {offsets = [0, 1], sizes = [8, 1], strides = [1, 1]} : vector<8x4xi32> to vector<8x1xi32>
    %c0_i32_3 = arith.constant 0 : i32
    %27 = vector.broadcast %c0_i32_3 : i32 to vector<8x1xi32>
    %28 = arith.shrsi %26, %27 : vector<8x1xi32>
    %c1023_i32_4 = arith.constant 1023 : i32
    %29 = vector.broadcast %c1023_i32_4 : i32 to vector<8x1xi32>
    %30 = arith.andi %28, %29 : vector<8x1xi32>
    %31 = vector.broadcast %30 : vector<8x1xi32> to vector<8x128xi32>
    %32 = arith.cmpi eq, %31, %1 : vector<8x128xi32>
    %c10_i32_5 = arith.constant 10 : i32
    %33 = vector.broadcast %c10_i32_5 : i32 to vector<8x1xi32>
    %34 = arith.shrsi %26, %33 : vector<8x1xi32>
    %c1023_i32_6 = arith.constant 1023 : i32
    %35 = vector.broadcast %c1023_i32_6 : i32 to vector<8x1xi32>
    %36 = arith.andi %34, %35 : vector<8x1xi32>
    %37 = vector.broadcast %36 : vector<8x1xi32> to vector<8x128xi32>
    %38 = arith.cmpi eq, %37, %1 : vector<8x128xi32>
    %39 = arith.ori %32, %38 : vector<8x128xi1>
    %c20_i32_7 = arith.constant 20 : i32
    %40 = vector.broadcast %c20_i32_7 : i32 to vector<8x1xi32>
    %41 = arith.shrsi %26, %40 : vector<8x1xi32>
    %c1023_i32_8 = arith.constant 1023 : i32
    %42 = vector.broadcast %c1023_i32_8 : i32 to vector<8x1xi32>
    %43 = arith.andi %41, %42 : vector<8x1xi32>
    %44 = vector.broadcast %43 : vector<8x1xi32> to vector<8x128xi32>
    %45 = arith.cmpi eq, %44, %1 : vector<8x128xi32>
    %46 = arith.ori %39, %45 : vector<8x128xi1>
    %47 = arith.extui %46 : vector<8x128xi1> to vector<8x128xi32>
    %48 = arith.sitofp %47 : vector<8x128xi32> to vector<8x128xf32>
    %49 = arith.truncf %48 : vector<8x128xf32> to vector<8x128xbf16>
    %50 = vector.extract_strided_slice %0 {offsets = [0, 2], sizes = [8, 1], strides = [1, 1]} : vector<8x4xi32> to vector<8x1xi32>
    %c0_i32_9 = arith.constant 0 : i32
    %51 = vector.broadcast %c0_i32_9 : i32 to vector<8x1xi32>
    %52 = arith.shrsi %50, %51 : vector<8x1xi32>
    %c1023_i32_10 = arith.constant 1023 : i32
    %53 = vector.broadcast %c1023_i32_10 : i32 to vector<8x1xi32>
    %54 = arith.andi %52, %53 : vector<8x1xi32>
    %55 = vector.broadcast %54 : vector<8x1xi32> to vector<8x128xi32>
    %56 = arith.cmpi eq, %55, %1 : vector<8x128xi32>
    %c10_i32_11 = arith.constant 10 : i32
    %57 = vector.broadcast %c10_i32_11 : i32 to vector<8x1xi32>
    %58 = arith.shrsi %50, %57 : vector<8x1xi32>
    %c1023_i32_12 = arith.constant 1023 : i32
    %59 = vector.broadcast %c1023_i32_12 : i32 to vector<8x1xi32>
    %60 = arith.andi %58, %59 : vector<8x1xi32>
    %61 = vector.broadcast %60 : vector<8x1xi32> to vector<8x128xi32>
    %62 = arith.cmpi eq, %61, %1 : vector<8x128xi32>
    %63 = arith.ori %56, %62 : vector<8x128xi1>
    %c20_i32_13 = arith.constant 20 : i32
    %64 = vector.broadcast %c20_i32_13 : i32 to vector<8x1xi32>
    %65 = arith.shrsi %50, %64 : vector<8x1xi32>
    %c1023_i32_14 = arith.constant 1023 : i32
    %66 = vector.broadcast %c1023_i32_14 : i32 to vector<8x1xi32>
    %67 = arith.andi %65, %66 : vector<8x1xi32>
    %68 = vector.broadcast %67 : vector<8x1xi32> to vector<8x128xi32>
    %69 = arith.cmpi eq, %68, %1 : vector<8x128xi32>
    %70 = arith.ori %63, %69 : vector<8x128xi1>
    %71 = arith.extui %70 : vector<8x128xi1> to vector<8x128xi32>
    %72 = arith.sitofp %71 : vector<8x128xi32> to vector<8x128xf32>
    %73 = arith.truncf %72 : vector<8x128xf32> to vector<8x128xbf16>
    %74 = vector.extract_strided_slice %0 {offsets = [0, 3], sizes = [8, 1], strides = [1, 1]} : vector<8x4xi32> to vector<8x1xi32>
    %c0_i32_15 = arith.constant 0 : i32
    %75 = vector.broadcast %c0_i32_15 : i32 to vector<8x1xi32>
    %76 = arith.shrsi %74, %75 : vector<8x1xi32>
    %c1023_i32_16 = arith.constant 1023 : i32
    %77 = vector.broadcast %c1023_i32_16 : i32 to vector<8x1xi32>
    %78 = arith.andi %76, %77 : vector<8x1xi32>
    %79 = vector.broadcast %78 : vector<8x1xi32> to vector<8x128xi32>
    %80 = arith.cmpi eq, %79, %1 : vector<8x128xi32>
    %c10_i32_17 = arith.constant 10 : i32
    %81 = vector.broadcast %c10_i32_17 : i32 to vector<8x1xi32>
    %82 = arith.shrsi %74, %81 : vector<8x1xi32>
    %c1023_i32_18 = arith.constant 1023 : i32
    %83 = vector.broadcast %c1023_i32_18 : i32 to vector<8x1xi32>
    %84 = arith.andi %82, %83 : vector<8x1xi32>
    %85 = vector.broadcast %84 : vector<8x1xi32> to vector<8x128xi32>
    %86 = arith.cmpi eq, %85, %1 : vector<8x128xi32>
    %87 = arith.ori %80, %86 : vector<8x128xi1>
    %c20_i32_19 = arith.constant 20 : i32
    %88 = vector.broadcast %c20_i32_19 : i32 to vector<8x1xi32>
    %89 = arith.shrsi %74, %88 : vector<8x1xi32>
    %c1023_i32_20 = arith.constant 1023 : i32
    %90 = vector.broadcast %c1023_i32_20 : i32 to vector<8x1xi32>
    %91 = arith.andi %89, %90 : vector<8x1xi32>
    %92 = vector.broadcast %91 : vector<8x1xi32> to vector<8x128xi32>
    %93 = arith.cmpi eq, %92, %1 : vector<8x128xi32>
    %94 = arith.ori %87, %93 : vector<8x128xi1>
    %95 = arith.extui %94 : vector<8x128xi1> to vector<8x128xi32>
    %96 = arith.sitofp %95 : vector<8x128xi32> to vector<8x128xf32>
    %97 = arith.truncf %96 : vector<8x128xf32> to vector<8x128xbf16>
    %98 = tpu.concatenate %25, %49, %73, %97 in 1 : vector<8x128xbf16>, vector<8x128xbf16>, vector<8x128xbf16>, vector<8x128xbf16> -> vector<8x512xbf16>
    %c0_21 = arith.constant 0 : index
    %c0_22 = arith.constant 0 : index
    %99 = vector.load %arg2[%c0_21, %c0_22] : memref<512x128xbf16, #tpu.memory_space<vmem>>, vector<512x128xbf16>
    %cst = arith.constant dense<0.000000e+00> : vector<8x128xf32>
    %100 = tpu.matmul %98, %99, %cst {dimension_numbers = #tpu.dot_dimension_numbers<[1], [0], [0], [1], [0, 0, 1, 1], [], []>} : vector<8x512xbf16>, vector<512x128xbf16>, vector<8x128xf32> -> vector<8x128xf32>
    %c0_23 = arith.constant 0 : index
    %c0_24 = arith.constant 0 : index
    %101 = vector.load %arg3[%c0_23, %c0_24] : memref<512x128xbf16, #tpu.memory_space<vmem>>, vector<512x128xbf16>
    %cst_25 = arith.constant dense<0.000000e+00> : vector<8x128xf32>
    %102 = tpu.matmul %98, %101, %cst_25 {dimension_numbers = #tpu.dot_dimension_numbers<[1], [0], [0], [1], [0, 0, 1, 1], [], []>} : vector<8x512xbf16>, vector<512x128xbf16>, vector<8x128xf32> -> vector<8x128xf32>
    %103 = arith.addf %100, %102 : vector<8x128xf32>
    %c0_26 = arith.constant 0 : index
    %c0_27 = arith.constant 0 : index
    %104 = vector.load %arg4[%c0_26, %c0_27] : memref<8x128xf32, #tpu.memory_space<vmem>>, vector<8x128xf32>
    tpu.vector_store %arg4[%c0_26, %c0_27], %103 {strides = array<i32>} : memref<8x128xf32, #tpu.memory_space<vmem>>, vector<8x128xf32>,
    return
  }
  func.func @transform_0(%arg0: i32) -> (i32, i32) {
    %c0_i32 = arith.constant 0 : i32
    %c0_i32_0 = arith.constant 0 : i32
    return %arg0, %c0_i32 : i32, i32
  }
  func.func @transform_1(%arg0: i32) -> (i32, i32) {
    %c0_i32 = arith.constant 0 : i32
    %c0_i32_0 = arith.constant 0 : i32
    %c0_i32_1 = arith.constant 0 : i32
    return %c0_i32, %c0_i32_0 : i32, i32
  }
  func.func @transform_2(%arg0: i32) -> (i32, i32) {
    %c0_i32 = arith.constant 0 : i32
    %c0_i32_0 = arith.constant 0 : i32
    %c0_i32_1 = arith.constant 0 : i32
    return %c0_i32, %c0_i32_0 : i32, i32
  }
  func.func @transform_3(%arg0: i32) -> (i32, i32) {
    %c0_i32 = arith.constant 0 : i32
    %c0_i32_0 = arith.constant 0 : i32
    return %arg0, %c0_i32 : i32, i32
  }
}

</mosaic_0001>

<bundles_post_ra>
// kernel: tpu_custom_call.1
= control target key start
LH: loop header
LB: loop body
LE: loop exit
PB: predicated region body
PF: predicated region fallthrough
CT: control target
= control target key end

     0   :  { %8 = vsyncpa [#allocation3], 0  ;;  %s1264_s0 = inlined_call_operand.vmem [shape: s32[8,4], index: 0, kind: input, shape index: {}]   ;;  %s1265_s1 = inlined_call_operand.hbm [shape: bf16[512,128], index: 1, kind: input, shape index: {}]   ;;  %s1266_s2 = inlined_call_operand.hbm [shape: bf16[512,128], index: 2, kind: input, shape index: {}]   ;;  %s1267_s3 = inlined_call_operand.hbm [shape: f32[8,128], index: 3, kind: output, shape index: {}]  }
   0x1   :  { %9 = vsyncpa [#allocation6], 0 }
   0x2   :  { %10 = vsyncpa [#allocation4], 0  ;;  %s1136_s12 = smov [#allocation2]   ;;  %s1064_s16 = scalar_lea.hbm %s1265_s1, 4096 }
   0x3   :  { %s18_s13 = sshll.u32 %s1136_s12, 4  ;;  %p1065_p0 = scmp.ne.s32.totalorder %s1265_s1, %s1064_s16  ;;  %s19_s13 = int_to_ptr.vmem [resolvable:$true] %s18_s13 }
   0x4   :  { %p1068_p1 = scmp.lt.u32.totalorder %s1064_s16, %s1265_s1 }
   0x6   :  { %p1070_p2 = pnand %p1068_p1, %p1065_p0 }
   0x8   :  { %1073 = shalt.err (!%p1070_p2)
}
   0x9   :  { %s1074_s21 = scalar_lea.vmem %s19_s13, 4096  ;;  %p1079_p4 = scmp.lt.s32.totalorder %s19_s13, %s19_s13 }
   0xa   :  { %p1075_p3 = scmp.ne.s32.totalorder %s19_s13, %s1074_s21  ;;  %p1080_p5 = scmp.lt.s32.totalorder %s1074_s21, %s1074_s21 }
   0xc   :  { %p1081_p6 = por %p1080_p5, %p1079_p4 }
   0xe   :  { %p1082_p7 = pnand %p1081_p6, %p1075_p3 }
  0x10   :  { %1085 = shalt.err (!%p1082_p7)
}
  0x11   :  { %s1137_s22 = smov 64   ;;  %s1138_s23 = smov 4  }
  0x12   :  { %24 = dma.hbm_to_vmem [thread:$0]  %s1265_s1, 4096, %s19_s13, [#allocation3], %s1137_s22, %s1137_s22, %s1138_s23  }
  0x13   :  { %s1139_s26 = smov [#allocation5]   ;;  %s1086_s30 = scalar_lea.hbm %s1266_s2, 4096 }
  0x14   :  { %s30_s27 = sshll.u32 %s1139_s26, 4  ;;  %p1087_p8 = scmp.ne.s32.totalorder %s1266_s2, %s1086_s30  ;;  %s31_s27 = int_to_ptr.vmem [resolvable:$true] %s30_s27 }
  0x15   :  { %p1090_p9 = scmp.lt.u32.totalorder %s1086_s30, %s1266_s2 }
  0x17   :  { %p1092_p10 = pnand %p1090_p9, %p1087_p8 }
  0x19   :  { %1095 = shalt.err (!%p1092_p10)
}
  0x1a   :  { %s1096_s8 = scalar_lea.vmem %s31_s27, 4096  ;;  %p1101_p12 = scmp.lt.s32.totalorder %s31_s27, %s31_s27 }
  0x1b   :  { %p1097_p11 = scmp.ne.s32.totalorder %s31_s27, %s1096_s8  ;;  %p1102_p13 = scmp.lt.s32.totalorder %s1096_s8, %s1096_s8 }
  0x1d   :  { %p1103_p0 = por %p1102_p13, %p1101_p12 }
  0x1f   :  { %p1104_p1 = pnand %p1103_p0, %p1097_p11 }
  0x21   :  { %1107 = shalt.err (!%p1104_p1)
}
  0x22   :  { %36 = dma.hbm_to_vmem [thread:$0]  %s1266_s2, 4096, %s31_s27, [#allocation6], %s1137_s22, %s1137_s22, %s1138_s23  }
  0x23   :  { %1130 = dma.done.wait [#allocation3], 4096  }
  0x24   :  { %1131 = vsyncadd [#allocation3], 4294963200 }
  0x25   :  { %1132 = dma.done.wait [#allocation6], 4096  }
  0x26   :  { %1133 = vsyncadd [#allocation6], 4294963200  ;;  %v1140_v0 = vmov 1   ;;  %v1141_v1 = vmov 0   ;;  %v44_v2 = vld [vmem:[%s1264_s0] sm:$0xff]  ;;  %v1000_v5 = vld [vmem:[#allocation5 + $0x40] sm:$0xff]   ;;  %v45_v44 = vlaneseq }
  0x27   :  { %991 = vset.pattern.permute.xlu0 %v1140_v0  ;;  %992 = vset.pattern.permute.xlu1 %v1141_v1  ;;  %v47_v3 = vand.u32 1023, %v44_v2  ;;  %v52_v4 = vshra.s32 %v44_v2, 10  ;;  %v1001_v6 = vld [vmem:[#allocation5] sm:$0xff]   ;;  %v59_v8 = vshra.s32 %v44_v2, 20  ;;  %v1002_v9 = vld [vmem:[#allocation5 + $0x48] sm:$0xff]   ;;  %v1004_v11 = vld [vmem:[#allocation5 + $0x50] sm:$0xff]  }
  0x28   :  { %893 = vmatprep.subr.bf16.mxu0 %v1000_v5  ;;  %v1003_v10 = vld [vmem:[#allocation5 + $0x8] sm:$0xff]   ;;  %v1005_v13 = vld [vmem:[#allocation5 + $0x10] sm:$0xff]   ;;  %v1006_v14 = vld [vmem:[#allocation5 + $0x58] sm:$0xff]   ;;  %v1142_v19 = vmov 3   ;;  %v1143_v25 = vmov 2   ;;  %v46_v47 = vand.u32 127, %v45_v44 }
  0x29   :  { %49 = vperm.xlu1 %992, %v47_v3   ;;  %70 = vperm.xlu0 %991, %v47_v3   ;;  %v53_v7 = vand.u32 1023, %v52_v4  ;;  %v60_v12 = vand.u32 1023, %v59_v8  ;;  %v1010_v15 = vld [vmem:[#allocation5 + $0xc0] sm:$0xff]   ;;  %v1007_v16 = vld [vmem:[#allocation5 + $0x18] sm:$0xff]   ;;  %v1014_v20 = vld [vmem:[#allocation5 + $0xc8] sm:$0xff]   ;;  %s1145_s0 = smov [#allocation7]  }
  0x2a   :  { %894 = vmatpush3.bf16.msra.mxu0 %v1001_v6  ;;  %915 = vmatprep.subr.bf16.mxu1 %v1010_v15  ;;  %v1012_v17 = vld [vmem:[#allocation5 + $0x80] sm:$0xff]   ;;  %v1011_v22 = vld [vmem:[#allocation5 + $0x68] sm:$0xff]   ;;  %v1018_v24 = vld [vmem:[#allocation5 + $0xd0] sm:$0xff]   ;;  %v1144_v56 = vmov 1.0|1.0   ;;  %s799_s2 = sshll.u32 %s1145_s0, 4  ;;  %s800_s2 = int_to_ptr.vmem [resolvable:$true] %s799_s2 }
  0x2b   :  { %895 = vmatprep.subr.bf16.mxu0 %v1002_v9  ;;  %v1008_v18 = vld [vmem:[#allocation5 + $0x60] sm:$0xff]   ;;  %916 = vmatpush3.bf16.msra.mxu1 %v1012_v17  ;;  %v1016_v23 = vld [vmem:[#allocation5 + $0x88] sm:$0xff]   ;;  %v1015_v27 = vld [vmem:[#allocation5 + $0x70] sm:$0xff]   ;;  %s1108_s12 = scalar_lea.vmem %s800_s2, 128  ;;  %p1113_p3 = scmp.lt.s32.totalorder %s800_s2, %s800_s2 }
  0x2c   :  { %v1009_v21 = vld [vmem:[#allocation5 + $0x20] sm:$0xff]   ;;  %917 = vmatprep.subr.bf16.mxu1 %v1014_v20  ;;  %v1013_v26 = vld [vmem:[#allocation5 + $0x28] sm:$0xff]   ;;  %v1020_v28 = vld [vmem:[#allocation5 + $0x90] sm:$0xff]   ;;  %p1109_p2 = scmp.ne.s32.totalorder %s800_s2, %s1108_s12  ;;  %p1114_p4 = scmp.lt.s32.totalorder %s1108_s12, %s1108_s12 }
  0x2d   :  { %55 = vperm.xlu1 %992, %v53_v7   ;;  %74 = vperm.xlu0 %991, %v53_v7   ;;  %v1022_v29 = vld [vmem:[#allocation5 + $0xd8] sm:$0xff]   ;;  %v1017_v30 = vld [vmem:[#allocation5 + $0x30] sm:$0xff]   ;;  %v1026_v33 = vld [vmem:[#allocation5 + $0xe0] sm:$0xff]  }
  0x2e   :  { %896 = vmatpush3.bf16.msra.mxu0 %v1003_v10  ;;  %v1019_v31 = vld [vmem:[#allocation5 + $0x78] sm:$0xff]   ;;  %v1024_v35 = vld [vmem:[#allocation2 + $0x40] sm:$0xff]   ;;  %v1030_v37 = vld [vmem:[#allocation5 + $0xe8] sm:$0xff]   ;;  %p1115_p5 = por %p1114_p4, %p1113_p3 }
  0x2f   :  { %897 = vmatprep.subr.bf16.mxu0 %v1004_v11  ;;  %918 = vmatpush3.bf16.msra.mxu1 %v1016_v23  ;;  %v1023_v32 = vld [vmem:[#allocation5 + $0x98] sm:$0xff]   ;;  %v1027_v36 = vld [vmem:[#allocation5 + $0xa0] sm:$0xff]   ;;  %v1031_v38 = vld [vmem:[#allocation5 + $0xa8] sm:$0xff]  }
  0x30   :  { %919 = vmatprep.subr.bf16.mxu1 %v1018_v24  ;;  %v1021_v34 = vld [vmem:[#allocation5 + $0x38] sm:$0xff]   ;;  %v1034_v39 = vld [vmem:[#allocation5 + $0xf0] sm:$0xff]   ;;  %v1042_v43 = vld [vmem:[#allocation2 + $0xc0] sm:$0xff]   ;;  %p1116_p6 = pnand %p1115_p5, %p1109_p2 }
  0x31   :  { %62 = vperm.xlu1 %992, %v60_v12   ;;  %79 = vperm.xlu0 %991, %v60_v12   ;;  %v1035_v40 = vld [vmem:[#allocation5 + $0xb0] sm:$0xff]   ;;  %v1038_v41 = vld [vmem:[#allocation5 + $0xf8] sm:$0xff]   ;;  %v1025_v53 = vld [vmem:[#allocation2] sm:$0xff]  }
  0x32   :  { %898 = vmatpush3.bf16.msra.mxu0 %v1005_v13  ;;  %v1039_v42 = vld [vmem:[#allocation5 + $0xb8] sm:$0xff]   ;;  %v1028_v55 = vld [vmem:[#allocation2 + $0x48] sm:$0xff]   ;;  %v1032_v59 = vld [vmem:[#allocation2 + $0x50] sm:$0xff]  }
  0x33   :  { %899 = vmatprep.subr.bf16.mxu0 %v1006_v14  ;;  %920 = vmatpush3.bf16.msra.mxu1 %v1020_v28  ;;  %v1029_v57 = vld [vmem:[#allocation2 + $0x8] sm:$0xff]   ;;  %v1033_v61 = vld [vmem:[#allocation2 + $0x10] sm:$0xff]   ;;  %v1036_v62 = vld [vmem:[#allocation2 + $0x58] sm:$0xff]  }
  0x34   :  { %921 = vmatprep.subr.bf16.mxu1 %v1022_v29  ;;  %v1037_v1 = vld [vmem:[#allocation2 + $0x18] sm:$0xff]   ;;  %v1041_v5 = vld [vmem:[#allocation2 + $0x20] sm:$0xff]   ;;  %v1043_v6 = vld [vmem:[#allocation2 + $0x68] sm:$0xff]  }
  0x35   :  { %994 = vset.pattern.permute.xlu1 %v1142_v19  ;;  %993 = vset.pattern.permute.xlu0 %v1142_v19  ;;  %v1046_v9 = vld [vmem:[#allocation2 + $0xc8] sm:$0xff]   ;;  %v1047_v11 = vld [vmem:[#allocation2 + $0x70] sm:$0xff]   ;;  %v1051_v15 = vld [vmem:[#allocation2 + $0x78] sm:$0xff]  }
  0x36   :  { %108 = vperm.xlu1 %994, %v53_v7   ;;  %104 = vperm.xlu0 %993, %v47_v3   ;;  %v1045_v10 = vld [vmem:[#allocation2 + $0x28] sm:$0xff]   ;;  %v1050_v13 = vld [vmem:[#allocation2 + $0xd0] sm:$0xff]   ;;  %v1054_v17 = vld [vmem:[#allocation2 + $0xd8] sm:$0xff]  }
  0x37   :  { %900 = vmatpush3.bf16.msra.mxu0 %v1007_v16  ;;  %922 = vmatpush3.bf16.msra.mxu1 %v1023_v32  ;;  %v1049_v14 = vld [vmem:[#allocation2 + $0x30] sm:$0xff]   ;;  %v1056_v20 = vld [vmem:[#allocation2 + $0xe0] sm:$0xff]   ;;  %v1059_v23 = vld [vmem:[#allocation2 + $0xa8] sm:$0xff]  }
  0x38   :  { %901 = vmatprep.subr.bf16.mxu0 %v1008_v18  ;;  %923 = vmatprep.subr.bf16.mxu1 %v1026_v33  ;;  %v1052_v16 = vld [vmem:[#allocation2 + $0x90] sm:$0xff]   ;;  %v1053_v18 = vld [vmem:[#allocation2 + $0x38] sm:$0xff]  }
  0x39   :  { %v1060_v24 = vld [vmem:[#allocation2 + $0xf0] sm:$0xff]  }
  0x3a   :  { %995 = vset.pattern.permute.xlu1 %v1143_v25  ;;  %996 = vset.pattern.permute.xlu0 %v1143_v25 }
  0x3b   :  { %87 = vperm.xlu1 %995, %v47_v3   ;;  %91 = vperm.xlu0 %996, %v53_v7   ;;  %v1040_v3 = vld [vmem:[#allocation2 + $0x60] sm:$0xff]  }
  0x3c   :  { %902 = vmatpush3.bf16.msra.mxu0 %v1009_v21  ;;  %924 = vmatpush3.bf16.msra.mxu1 %v1027_v36  ;;  %v1044_v7 = vld [vmem:[#allocation2 + $0x80] sm:$0xff]  }
  0x3d   :  { %903 = vmatprep.subr.bf16.mxu0 %v1011_v22  ;;  %925 = vmatprep.subr.bf16.mxu1 %v1030_v37  ;;  %v1057_v21 = vld [vmem:[#allocation2 + $0xa0] sm:$0xff]   ;;  %v1058_v22 = vld [vmem:[#allocation2 + $0xe8] sm:$0xff]  }
  0x3f   :  { %997 = vset.pattern.permute.xlu1 %v1142_v19  ;;  %999 = vset.pattern.permute.xlu0 %v1142_v19  ;;  %v1055_v19 = vld [vmem:[#allocation2 + $0x98] sm:$0xff]  }
  0x40   :  { %113 = vperm.xlu1 %997, %v60_v12   ;;  %904 = vmatpush3.bf16.msra.mxu0 %v1013_v26  ;;  %v1062_v26 = vld [vmem:[#allocation2 + $0xf8] sm:$0xff]  }
  0x41   :  { %905 = vmatprep.subr.bf16.mxu0 %v1015_v27  ;;  %926 = vmatpush3.bf16.msra.mxu1 %v1031_v38  ;;  %v1063_v27 = vld [vmem:[#allocation2 + $0xb8] sm:$0xff]  }
  0x42   :  { %927 = vmatprep.subr.bf16.mxu1 %v1034_v39 }
  0x44   :  { %998 = vset.pattern.permute.xlu1 %v1143_v25  ;;  %906 = vmatpush3.bf16.msra.mxu0 %v1017_v30  ;;  %v1061_v25 = vld [vmem:[#allocation2 + $0xb0] sm:$0xff]  }
  0x45   :  { %96 = vperm.xlu1 %998, %v60_v12   ;;  %907 = vmatprep.subr.bf16.mxu0 %v1019_v31  ;;  %v1048_v12 = vld [vmem:[#allocation2 + $0x88] sm:$0xff]  }
  0x46   :  { %928 = vmatpush3.bf16.msra.mxu1 %v1035_v40 }
  0x47   :  { %929 = vmatprep.subr.bf16.mxu1 %v1038_v41 }
  0x48   :  { %908 = vmatpush3.bf16.msra.mxu0 %v1021_v34 }
  0x49   :  { %937 = vmatprep.subr.bf16.mxu0 %v1024_v35 }
  0x4a   :  { %930 = vmatpush3.bf16.msra.mxu1 %v1039_v42 }
  0x4b   :  { %959 = vmatprep.subr.bf16.mxu1 %v1042_v43 }
  0xa8   :  { %v50_v45 = vpop.permute.xlu1 %49  ;;  %v71_v46 = vpop.permute.xlu0 %70 }
  0xa9   :  { %vm72_vm1 = vcmp.eq.s32.totalorder %v71_v46, %v46_v47  ;;  %vm51_vm3 = vcmp.eq.s32.totalorder %v50_v45, %v46_v47 }
  0xac   :  { %v56_v48 = vpop.permute.xlu1 %55  ;;  %v75_v49 = vpop.permute.xlu0 %74 }
  0xad   :  { %vm57_vm0 = vcmp.eq.s32.totalorder %v56_v48, %v46_v47  ;;  %vm76_vm2 = vcmp.eq.s32.totalorder %v75_v49, %v46_v47 }
  0xae   :  { %vm58_vm4 = vmor %vm51_vm3, %vm57_vm0 }
  0xaf   :  { %vm77_vm5 = vmor %vm72_vm1, %vm76_vm2 }
  0xb0   :  { %v63_v50 = vpop.permute.xlu1 %62  ;;  %v80_v51 = vpop.permute.xlu0 %79 }
  0xb1   :  { %vm64_vm6 = vcmp.eq.s32.totalorder %v63_v50, %v46_v47  ;;  %vm81_vm7 = vcmp.eq.s32.totalorder %v80_v51, %v46_v47 }
  0xb2   :  { %vm1193_vm8 = vmor %vm58_vm4, %vm64_vm6 }
  0xb3   :  { %vm847_vm9 = vmpackc.low %vm1193_vm8, %vm1193_vm8 }
  0xb4   :  { %vm82_vm10 = vmor %vm77_vm5, %vm81_vm7 }
  0xb5   :  { %vm845_vm11 = vmpackc.low %vm82_vm10, %vm82_vm10  ;;  %v109_v54 = vpop.permute.xlu1 %108  ;;  %v105_v58 = vpop.permute.xlu0 %104 }
  0xb6   :  { %846 = vmatprep.mubr.msk.bf16.mxu0 %vm845_vm11, %v1144_v56  ;;  %vm110_vm12 = vcmp.eq.s32.totalorder %v109_v54, %v46_v47  ;;  %vm106_vm13 = vcmp.eq.s32.totalorder %v105_v58, %v46_v47 }
  0xb7   :  { %848 = vmatmul.mubr.msk.bf16.vlgmr.msra.gmra.mrb[0].mxu0 %vm847_vm9, %v1144_v56  ;;  %vm111_vm14 = vmor %vm106_vm13, %vm110_vm12 }
  0xb8   :  { %938 = vmatpush3.bf16.msra.mxu0 %v1025_v53  ;;  %886 = vmatprep.mubr.msk.bf16.mxu0 %vm845_vm11, %v1144_v56 }
  0xb9   :  { %939 = vmatprep.subr.bf16.mxu0 %v1028_v55 }
  0xba   :  { %v88_v60 = vpop.permute.xlu1 %87  ;;  %v92_v63 = vpop.permute.xlu0 %91 }
  0xbb   :  { %vm89_vm1 = vcmp.eq.s32.totalorder %v88_v60, %v46_v47  ;;  %vm93_vm2 = vcmp.eq.s32.totalorder %v92_v63, %v46_v47 }
  0xbc   :  { %940 = vmatpush3.bf16.msra.mxu0 %v1029_v57  ;;  %vm94_vm4 = vmor %vm89_vm1, %vm93_vm2 }
  0xbd   :  { %941 = vmatprep.subr.bf16.mxu0 %v1032_v59 }
  0xbf   :  { %v114_v0 = vpop.permute.xlu1 %113 }
  0xc0   :  { %942 = vmatpush3.bf16.msra.mxu0 %v1033_v61  ;;  %vm115_vm15 = vcmp.eq.s32.totalorder %v114_v0, %v46_v47 }
  0xc1   :  { %943 = vmatprep.subr.bf16.mxu0 %v1036_v62  ;;  %vm1208_vm0 = vmor %vm111_vm14, %vm115_vm15 }
  0xc2   :  { %vm849_vm3 = vmpackc.low %vm1208_vm0, %vm1208_vm0 }
  0xc3   :  { %850 = vmatprep.mubr.msk.bf16.mxu1 %vm849_vm3, %v1144_v56 }
  0xc4   :  { %944 = vmatpush3.bf16.msra.mxu0 %v1037_v1  ;;  %v97_v4 = vpop.permute.xlu1 %96 }
  0xc5   :  { %vm98_vm5 = vcmp.eq.s32.totalorder %v97_v4, %v46_v47  ;;  %945 = vmatprep.subr.bf16.mxu0 %v1040_v3 }
  0xc6   :  { %vm1221_vm6 = vmor %vm94_vm4, %vm98_vm5 }
  0xc7   :  { %vm851_vm7 = vmpackc.low %vm1221_vm6, %vm1221_vm6 }
  0xc8   :  { %946 = vmatpush3.bf16.msra.mxu0 %v1041_v5  ;;  %852 = vmatmul.mubr.msk.bf16.vlgmr.msra.gmra.mrb[0].mxu1 %vm851_vm7, %v1144_v56 }
  0xc9   :  { %947 = vmatprep.subr.bf16.mxu0 %v1043_v6  ;;  %960 = vmatpush3.bf16.msra.mxu1 %v1044_v7 }
  0xca   :  { %890 = vmatprep.mubr.msk.bf16.mxu1 %vm849_vm3, %v1144_v56  ;;  %961 = vmatprep.subr.bf16.mxu1 %v1046_v9 }
  0xcc   :  { %948 = vmatpush3.bf16.msra.mxu0 %v1045_v10 }
  0xcd   :  { %949 = vmatprep.subr.bf16.mxu0 %v1047_v11  ;;  %962 = vmatpush3.bf16.msra.mxu1 %v1048_v12 }
  0xce   :  { %963 = vmatprep.subr.bf16.mxu1 %v1050_v13 }
  0xd0   :  { %950 = vmatpush3.bf16.msra.mxu0 %v1049_v14 }
  0xd1   :  { %951 = vmatprep.subr.bf16.mxu0 %v1051_v15  ;;  %964 = vmatpush3.bf16.msra.mxu1 %v1052_v16 }
  0xd2   :  { %965 = vmatprep.subr.bf16.mxu1 %v1054_v17 }
  0xd4   :  { %952 = vmatpush3.bf16.msra.mxu0 %v1053_v18 }
  0xd5   :  { %966 = vmatpush3.bf16.msra.mxu1 %v1055_v19 }
  0xd6   :  { %967 = vmatprep.subr.bf16.mxu1 %v1056_v20 }
  0xd7   :  { %888 = vmatmul.mubr.msk.bf16.vlgmr.msra.gmra.mrb[4].mxu0 %vm847_vm9, %v1144_v56 }
  0xd9   :  { %968 = vmatpush3.bf16.msra.mxu1 %v1057_v21 }
  0xda   :  { %969 = vmatprep.subr.bf16.mxu1 %v1058_v22 }
  0xdd   :  { %970 = vmatpush3.bf16.msra.mxu1 %v1059_v23 }
  0xde   :  { %971 = vmatprep.subr.bf16.mxu1 %v1060_v24 }
  0xe1   :  { %972 = vmatpush3.bf16.msra.mxu1 %v1061_v25 }
  0xe2   :  { %973 = vmatprep.subr.bf16.mxu1 %v1062_v26 }
  0xe5   :  { %974 = vmatpush3.bf16.msra.mxu1 %v1063_v27 }
  0xe8   :  { %892 = vmatmul.mubr.msk.bf16.vlgmr.msra.gmra.mrb[4].mxu1 %vm851_vm7, %v1144_v56 }
 0x18a   :  { %v909_v28 = vpop.f32.mrb[0].mxu0 }
 0x18b   :  { %v910_v29 = vpop.f32.mrb[1].mxu0 }
 0x18c   :  { %v911_v30 = vadd.f32 %v910_v29, %v909_v28  ;;  %v912_v31 = vpop.f32.mrb[2].mxu0 }
 0x18d   :  { %v913_v32 = vpop.f32.mrb[3].mxu0 }
 0x19b   :  { %v931_v33 = vpop.f32.mrb[0].mxu1 }
 0x19c   :  { %v932_v34 = vpop.f32.mrb[1].mxu1 }
 0x19d   :  { %v933_v35 = vadd.f32 %v932_v34, %v931_v33  ;;  %v934_v36 = vpop.f32.mrb[2].mxu1 }
 0x19e   :  { %v935_v37 = vpop.f32.mrb[3].mxu1 }
 0x19f   :  { %v515_v38 = vadd.f32 %v933_v35, %v911_v30 }
 0x1aa   :  { %v953_v39 = vpop.f32.mrb[4].mxu0 }
 0x1ab   :  { %v954_v40 = vpop.f32.mrb[5].mxu0 }
 0x1ac   :  { %v955_v41 = vadd.f32 %v954_v40, %v953_v39  ;;  %v956_v42 = vpop.f32.mrb[6].mxu0 }
 0x1ad   :  { %v957_v43 = vpop.f32.mrb[7].mxu0 }
 0x1ae   :  { %v747_v44 = vadd.f32 %v955_v41, %v515_v38 }
 0x1bb   :  { %v975_v45 = vpop.f32.mrb[4].mxu1 }
 0x1bc   :  { %v976_v46 = vpop.f32.mrb[5].mxu1 }
 0x1bd   :  { %v977_v47 = vadd.f32 %v976_v46, %v975_v45  ;;  %v978_v48 = vpop.f32.mrb[6].mxu1 }
 0x1be   :  { %v979_v49 = vpop.f32.mrb[7].mxu1 }
 0x1bf   :  { %v787_v50 = vadd.f32 %v977_v47, %v747_v44 }
 0x1c1   :  { %792 = vst [vmem:[#allocation7] sm:$0xff] %v787_v50 }
 0x1c2   :  { %1119 = shalt.err (!%p1116_p6)
}
 0x1c3   :  { %s1120_s15 = scalar_lea.hbm %s1267_s3, 128 }
 0x1c4   :  { %p1121_p7 = scmp.ne.s32.totalorder %s1267_s3, %s1120_s15  ;;  %p1124_p8 = scmp.lt.u32.totalorder %s1120_s15, %s1267_s3 }
 0x1c6   :  { %p1126_p9 = pnand %p1124_p8, %p1121_p7 }
 0x1c8   :  { %1129 = shalt.err (!%p1126_p9)
}
 0x1c9   :  { %802 = dma.vmem_to_hbm [thread:$0]  %s800_s2, 128, %s1267_s3, [#allocation4]  }
 0x1ca   :  { %1134 = dma.done.wait [#allocation4], 128  }
 0x1cb   :  { %1135 = vsyncadd [#allocation4], 4294967168 }
 0x1cc   :  { %806 = vsyncpa [#allocation3], 1 }
 0x1cd   :  { %807 = vsyncpa [#allocation6], 1 }
 0x1ce   :  { %808 = vsyncpa [#allocation4], 1 }

</bundles_post_ra>
